<compile_context>
chip_gen: v7x
topology: tpu7x:2x2x1
jax: 0.10.0
libtpu: 0.0.40
codegen_flags: <defaults>
</compile_context>

<pallas_src>
import math

import numpy as np

import jax
import jax.numpy as jnp
from jax.experimental import pallas as pl
from jax.experimental.pallas import tpu as pltpu


def _round_up(v, m):
    return ((v + m - 1) // m) * m


def _vmem_capacity_bytes():
    """Physical VMEM of the attached TPU generation (fallback: 128 MiB)."""
    try:
        return int(pltpu.get_tpu_info().vmem_capacity_bytes)
    except Exception:
        return 128 << 20


# Target row count (second-minor dim) for the per-tile operands.  ~512 keeps the
# 256x256 MXU (v6e/v7x; 128x128 on v5e) filled in M and K for both the diffusion
# and the block-diagonal feature mix, while bounding the Kronecker weight slab
# (<= K * 512 * 512 elements) and its zero-block overhead.
_MXU_TARGET_ROWS = 512


def _vmem_need(tt, fin_p, fout_p, n_p, K, x_bytes, c_bytes, out_bytes,
               resident_bufs=2):
    """Rough per-core VMEM working set for one grid step (bytes)."""
    x_blk = 2 * tt * fin_p * n_p * x_bytes               # double-buffered x tile
    y_blk = 2 * tt * fout_p * n_p * out_bytes            # double-buffered y tile
    s_res = resident_bufs * n_p * n_p * c_bytes          # resident S^T
    w_res = resident_bufs * K * (tt * fout_p) * (tt * fin_p) * c_bytes
    z_loc = tt * fin_p * n_p * max(c_bytes, x_bytes)     # z carry / in-kernel cast of x
    a_loc = 2 * tt * fout_p * n_p * 4                    # f32 accumulator + matmul temp
    return x_blk + y_blk + s_res + w_res + z_loc + a_loc


def _make_kernel(K, horner, compute_dtype):
    cdtype = jnp.dtype(compute_dtype)

    def kernel(s_ref, x_ref, w_ref, y_ref):
        # s_ref : (Np, Np)                   resident S^T          (compute dtype)
        # x_ref : (tt*Finp, Np)              x tile, rows = (t, f) (input dtype)
        # w_ref : (K, tt*Foutp, tt*Finp)     resident I_t (x) H_k^T (compute dtype)
        # y_ref : (tt*Foutp, Np)             y tile, rows = (t, g)
        #
        # All matmuls are plain 2-D MXU ops; N stays on the lane dim end to end.
        # The whole K-tap recurrence runs inside this single grid step (tap loop
        # unrolled), so no state persists across grid iterations and the grid
        # axis is purely "parallel".
        # TODO(synk): for very large K (>~8) reinstate a K grid axis (or a
        # fori_loop over taps) to bound unrolled code size.
        s = s_ref[...]
        x = x_ref[...].astype(cdtype)

        if horner:
            # Horner order (Fout < Fin): carry is only (tt*Foutp, Np) wide.
            #   y = X H_0 + (X H_1 + (X H_2 + ...) S^T) S^T
            acc = jnp.dot(w_ref[K - 1], x, preferred_element_type=jnp.float32)
            for k in range(K - 2, -1, -1):
                acc = (jnp.dot(acc.astype(cdtype), s,
                               preferred_element_type=jnp.float32)
                       + jnp.dot(w_ref[k], x,
                                 preferred_element_type=jnp.float32))
        else:
            # Direct order: z_k = z_{k-1} S^T carried in the compute dtype
            # (bf16 carry costs no accuracy: the MXU accumulates in f32 and z is
            # rounded before every MXU use anyway).  acc stays f32.
            z = x
            acc = jnp.dot(w_ref[0], z, preferred_element_type=jnp.float32)
            for k in range(1, K):
                z = jnp.dot(z, s,
                            preferred_element_type=jnp.float32).astype(cdtype)
                acc = acc + jnp.dot(w_ref[k], z,
                                    preferred_element_type=jnp.float32)

        y_ref[...] = acc.astype(y_ref.dtype)

    return kernel


def graph_filter_fc(x, S, W, K, *, compute_dtype=jnp.bfloat16, t_tile=None):
    """y[t, g, n] = sum_{k, f, m} S^k[n, m] * x[t, f, m] * W[f*K + k, g]."""
    T, Fin, N = x.shape
    Fout = W.shape[1]
    assert S.shape == (N, N)
    assert W.shape[0] == Fin * K

    cdtype = jnp.dtype(compute_dtype)
    out_dtype = jnp.dtype(x.dtype)
    c_bytes = cdtype.itemsize
    out_bytes = out_dtype.itemsize

    # Lane / sublane friendly padding: N (lane dim) -> multiple of 128,
    # Fin/Fout (merged into the sublane dim) -> multiple of 8 (16 when bf16-packed).
    sub = 16 if c_bytes == 2 else 8
    n_p = _round_up(N, 128)
    fin_p = _round_up(Fin, sub)
    fout_p = _round_up(Fout, sub)

    # ---- operand prep (XLA side; no transposes anywhere) --------------------
    # x: (T, Fin, N) -> 2-D (T*Finp, Np): rows are (t, f), N on lanes.  If the
    # feature / node dims are already aligned we pass x untouched (zero-copy
    # reshape, original dtype) and cast inside the kernel, skipping the extra
    # HBM round trip of a pad+cast pre-pass.
    if Fin == fin_p and N == n_p:
        x_in = x.reshape(T * fin_p, n_p)
    else:
        x_in = jnp.pad(x, ((0, 0), (0, fin_p - Fin), (0, n_p - N)))
        x_in = x_in.astype(cdtype).reshape(T * fin_p, n_p)
    x_bytes = jnp.dtype(x_in.dtype).itemsize

    # Pre-transposed shift operator: the diffusion is a plain (rows, N) x (N, N).
    s_t = jnp.pad(S.T, ((0, n_p - N), (0, n_p - N))).astype(cdtype)

    # Per-tap weights: torch flattens the feature axis as row f*K + k.
    w_t = jnp.transpose(W.reshape(Fin, K, Fout), (1, 2, 0))      # (K, Fout, Fin) = H_k^T
    w_t = jnp.pad(w_t, ((0, 0), (0, fout_p - Fout), (0, fin_p - Fin)))

    # ---- T-tile selection ----------------------------------------------------
    cap_bytes = _vmem_capacity_bytes()
    budget = (cap_bytes * 3) // 4          # ~96 MiB on v5e/v6e, ~48 MiB on v7x
    if t_tile is None:
        row_cap = max(1, _MXU_TARGET_ROWS // max(fin_p, fout_p))
        t_tile = 1
        for tt in range(1, min(T, row_cap) + 1):
            if T % tt:
                continue
            if _vmem_need(tt, fin_p, fout_p, n_p, K, x_bytes, c_bytes,
                          out_bytes) <= budget:
                t_tile = tt
    assert T % t_tile == 0, "t_tile must divide T"
    nt = T // t_tile
    need = _vmem_need(t_tile, fin_p, fout_p, n_p, K, x_bytes, c_bytes, out_bytes)
    # Raise the scoped-VMEM limit (v5e's default is only 16 MiB) but clamp it
    # safely below the generation's physical VMEM (64 MiB/TC on v7x).
    vmem_limit = int(min(cap_bytes - (cap_bytes >> 3),
                         max(need * 5 // 4 + (2 << 20), 32 << 20)))
    # TODO(synk): tile the N (contraction) dim of S^T for graphs where even
    # t_tile=1 exceeds the budget (n_p >= ~4k on v7x, ~8k on v5e/v6e).

    # Block-diagonal (Kronecker) per-tap weights  I_{t_tile} (x) H_k^T: the
    # feature mix for a whole tile becomes one dense 2-D MXU matmul
    # (t*Fout, t*Fin) @ (t*Fin, N) instead of t_tile tiny batched matmuls.
    eye_t = jnp.eye(t_tile, dtype=w_t.dtype)
    w_bd = jnp.einsum("ts,kgf->ktgsf", eye_t, w_t).reshape(
        K, t_tile * fout_p, t_tile * fin_p).astype(cdtype)

    # Horner order (mix first, diffuse the Fout-wide carry) wins whenever the
    # padded output width is narrower than the padded input width.
    horner = fout_p < fin_p
    kernel = _make_kernel(K, horner, cdtype)

    carry_p = fout_p if horner else fin_p
    flops = (2 * max(K - 1, 0) * T * carry_p * n_p * n_p            # diffusion
             + 2 * K * T * t_tile * fout_p * fin_p * n_p)           # block-diag mix
    bytes_accessed = (x_in.size * x_bytes + s_t.size * c_bytes
                      + w_bd.size * c_bytes + T * fout_p * n_p * out_bytes)
    cost = pl.CostEstimate(flops=int(flops), transcendentals=0,
                           bytes_accessed=int(bytes_accessed))
    out_shape = jax.ShapeDtypeStruct((T * fout_p, n_p), out_dtype)

    def _build(single_buffer_residents):
        resident_kwargs = {}
        if single_buffer_residents:
            # S^T and the Kronecker weights have constant index maps; a second
            # pipeline buffer for them is pure VMEM waste (biggest win on v7x's
            # 64 MiB/TC, where a resident S^T dominates residency).
            resident_kwargs = dict(pipeline_mode=pl.Buffered(1))
        grid_spec = pltpu.PrefetchScalarGridSpec(
            num_scalar_prefetch=0,
            grid=(nt,),
            in_specs=[
                pl.BlockSpec((n_p, n_p), lambda i: (0, 0),
                             **resident_kwargs),                          # S^T
                pl.BlockSpec((t_tile * fin_p, n_p), lambda i: (i, 0)),    # x tile
                pl.BlockSpec((K, t_tile * fout_p, t_tile * fin_p),
                             lambda i: (0, 0, 0), **resident_kwargs),     # weights
            ],
            out_specs=pl.BlockSpec((t_tile * fout_p, n_p), lambda i: (i, 0)),
        )
        return pl.pallas_call(
            kernel,
            out_shape=out_shape,
            grid_spec=grid_spec,
            compiler_params=pltpu.CompilerParams(
                dimension_semantics=("parallel",),
                vmem_limit_bytes=vmem_limit,
            ),
            cost_estimate=cost,
        )

    # Prefer single-buffered residents; fall back to default double-buffering
    # if this jax build does not support pipeline_mode on BlockSpec.
    y_p = None
    last_err = None
    for single_buf in (True, False):
        try:
            y_p = jax.block_until_ready(_build(single_buf)(s_t, x_in, w_bd))
            break
        except Exception as err:  # pragma: no cover - pipeline_mode fallback
            last_err = err
            y_p = None
    if y_p is None:
        raise last_err

    # Rows are (t, g) pairs -> reshape straight to (T, Fout, N); no transpose.
    return y_p.reshape(T, fout_p, n_p)[:, :Fout, :N]


def ref_forward(x, S, W, K):
    """Plain-JAX mirror of the torch forward (precomputed powers), f32."""
    T, Fin, N = x.shape
    spow = [jnp.eye(N, dtype=S.dtype)]
    for _ in range(1, K):
        spow.append(spow[-1] @ S)
    spow = jnp.stack(spow)
    xp = jnp.transpose(x, (2, 1, 0)).reshape(N, Fin * T)
    xl = jnp.stack([spow[k] @ xp for k in range(K)])             # (K, N, Fin*T)
    xl = xl.reshape(K, N, Fin, T).transpose(3, 1, 2, 0).reshape(T * N, K * Fin)
    y = xl @ W
    return y.reshape(T, N, -1).transpose(0, 2, 1)                # (T, Fout, N)


if __name__ == "__main__":
    key = jax.random.PRNGKey(0)
    k1, k2, k3, k4, k5, k6 = jax.random.split(key, 6)

    # Config 1 (Fout >= Fin -> direct-order path).
    T, Fin, Fout, N, K = 8, 4, 8, 16, 3
    S = jax.random.normal(k1, (N, N), dtype=jnp.float32) / math.sqrt(N)
    stdv = 1.0 / math.sqrt(Fin * K)
    W = jax.random.uniform(k2, (Fin * K, Fout), dtype=jnp.float32,
                           minval=-stdv, maxval=stdv)
    x = jax.random.normal(k3, (T, Fin, N), dtype=jnp.float32)
    y_ref = ref_forward(x, S, W, K)

    # f32 compute path with an explicit 2-tile grid: tight tolerance.
    y_f32 = jax.block_until_ready(
        graph_filter_fc(x, S, W, K, compute_dtype=jnp.float32, t_tile=4))
    np.testing.assert_allclose(np.asarray(y_f32), np.asarray(y_ref),
                               rtol=2e-4, atol=1e-4)

    # Default bf16-MXU path (f32 accumulation): bf16-level tolerance.
    y_bf16 = jax.block_until_ready(graph_filter_fc(x, S, W, K))
    np.testing.assert_allclose(np.asarray(y_bf16), np.asarray(y_ref),
                               rtol=5e-2, atol=1e-1)

    # Config 2 (Fout < Fin -> Horner-order path; Fin/N aligned -> x fast path).
    T2, Fin2, Fout2, N2 = 8, 16, 4, 128
    S2 = jax.random.normal(k4, (N2, N2), dtype=jnp.float32) / math.sqrt(N2)
    stdv2 = 1.0 / math.sqrt(Fin2 * K)
    W2 = jax.random.uniform(k5, (Fin2 * K, Fout2), dtype=jnp.float32,
                            minval=-stdv2, maxval=stdv2)
    x2 = jax.random.normal(k6, (T2, Fin2, N2), dtype=jnp.float32)
    y2_ref = ref_forward(x2, S2, W2, K)
    y2 = jax.block_until_ready(
        graph_filter_fc(x2, S2, W2, K, compute_dtype=jnp.float32))
    np.testing.assert_allclose(np.asarray(y2), np.asarray(y2_ref),
                               rtol=2e-4, atol=1e-4)

    print("KERNEL_OK")
</pallas_src>

<mosaic_0001>
module attributes {stable_mosaic.version = 11 : i64} {
  func.func @kernel(%arg0: i32, %arg1: memref<128x128xf32, #tpu.memory_space<vmem>>, %arg2: memref<32x128xf32, #tpu.memory_space<vmem>>, %arg3: memref<3x32x32xf32, #tpu.memory_space<vmem>>, %arg4: memref<32x128xf32, #tpu.memory_space<vmem>>) attributes {dimension_semantics = [#tpu.dimension_semantics<parallel>], iteration_bounds = array<i64: 2>, scalar_prefetch = 0 : i64, scratch_operands = 0 : i64, tpu.core_type = #tpu.core_type<tc>, window_params = [{pipeline_mode = #tpu.pipeline_mode<synchronous>, transform_indices = @transform_0, window_bounds = array<i64: 128, 128>}, {transform_indices = @transform_1, window_bounds = array<i64: 32, 128>}, {pipeline_mode = #tpu.pipeline_mode<synchronous>, transform_indices = @transform_2, window_bounds = array<i64: 3, 32, 32>}, {transform_indices = @transform_3, window_bounds = array<i64: 32, 128>}]} {
    %c0 = arith.constant 0 : index
    %c0_0 = arith.constant 0 : index
    %0 = vector.load %arg1[%c0, %c0_0] : memref<128x128xf32, #tpu.memory_space<vmem>>, vector<128x128xf32>
    %c0_1 = arith.constant 0 : index
    %c0_2 = arith.constant 0 : index
    %1 = vector.load %arg2[%c0_1, %c0_2] : memref<32x128xf32, #tpu.memory_space<vmem>>, vector<32x128xf32>
    %c0_3 = arith.constant 0 : index
    %c0_4 = arith.constant 0 : index
    %c0_5 = arith.constant 0 : index
    %2 = vector.load %arg3[%c0_3, %c0_4, %c0_5] : memref<3x32x32xf32, #tpu.memory_space<vmem>>, vector<1x32x32xf32>
    %3 = vector.shape_cast %2 : vector<1x32x32xf32> to vector<32x32xf32>
    %cst = arith.constant dense<0.000000e+00> : vector<32x128xf32>
    %4 = tpu.matmul %3, %1, %cst {dimension_numbers = #tpu.dot_dimension_numbers<[1], [0], [0], [1], [0, 0, 1, 1], [], []>} : vector<32x32xf32>, vector<32x128xf32>, vector<32x128xf32> -> vector<32x128xf32>
    %cst_6 = arith.constant dense<0.000000e+00> : vector<32x128xf32>
    %5 = tpu.matmul %1, %0, %cst_6 {dimension_numbers = #tpu.dot_dimension_numbers<[1], [0], [0], [1], [0, 0, 1, 1], [], []>} : vector<32x128xf32>, vector<128x128xf32>, vector<32x128xf32> -> vector<32x128xf32>
    %c1 = arith.constant 1 : index
    %c0_7 = arith.constant 0 : index
    %c0_8 = arith.constant 0 : index
    %6 = vector.load %arg3[%c1, %c0_7, %c0_8] : memref<3x32x32xf32, #tpu.memory_space<vmem>>, vector<1x32x32xf32>
    %7 = vector.shape_cast %6 : vector<1x32x32xf32> to vector<32x32xf32>
    %cst_9 = arith.constant dense<0.000000e+00> : vector<32x128xf32>
    %8 = tpu.matmul %7, %5, %cst_9 {dimension_numbers = #tpu.dot_dimension_numbers<[1], [0], [0], [1], [0, 0, 1, 1], [], []>} : vector<32x32xf32>, vector<32x128xf32>, vector<32x128xf32> -> vector<32x128xf32>
    %9 = arith.addf %4, %8 : vector<32x128xf32>
    %cst_10 = arith.constant dense<0.000000e+00> : vector<32x128xf32>
    %10 = tpu.matmul %5, %0, %cst_10 {dimension_numbers = #tpu.dot_dimension_numbers<[1], [0], [0], [1], [0, 0, 1, 1], [], []>} : vector<32x128xf32>, vector<128x128xf32>, vector<32x128xf32> -> vector<32x128xf32>
    %c2 = arith.constant 2 : index
    %c0_11 = arith.constant 0 : index
    %c0_12 = arith.constant 0 : index
    %11 = vector.load %arg3[%c2, %c0_11, %c0_12] : memref<3x32x32xf32, #tpu.memory_space<vmem>>, vector<1x32x32xf32>
    %12 = vector.shape_cast %11 : vector<1x32x32xf32> to vector<32x32xf32>
    %cst_13 = arith.constant dense<0.000000e+00> : vector<32x128xf32>
    %13 = tpu.matmul %12, %10, %cst_13 {dimension_numbers = #tpu.dot_dimension_numbers<[1], [0], [0], [1], [0, 0, 1, 1], [], []>} : vector<32x32xf32>, vector<32x128xf32>, vector<32x128xf32> -> vector<32x128xf32>
    %14 = arith.addf %9, %13 : vector<32x128xf32>
    %c0_14 = arith.constant 0 : index
    %c0_15 = arith.constant 0 : index
    %15 = vector.load %arg4[%c0_14, %c0_15] : memref<32x128xf32, #tpu.memory_space<vmem>>, vector<32x128xf32>
    tpu.vector_store %arg4[%c0_14, %c0_15], %14 {strides = array<i32>} : memref<32x128xf32, #tpu.memory_space<vmem>>, vector<32x128xf32>,
    return
  }
  func.func @transform_0(%arg0: i32) -> (i32, i32) {
    %c0_i32 = arith.constant 0 : i32
    %c0_i32_0 = arith.constant 0 : i32
    %c0_i32_1 = arith.constant 0 : i32
    return %c0_i32, %c0_i32_0 : i32, i32
  }
  func.func @transform_1(%arg0: i32) -> (i32, i32) {
    %c0_i32 = arith.constant 0 : i32
    %c0_i32_0 = arith.constant 0 : i32
    return %arg0, %c0_i32 : i32, i32
  }
  func.func @transform_2(%arg0: i32) -> (i32, i32, i32) {
    %c0_i32 = arith.constant 0 : i32
    %c0_i32_0 = arith.constant 0 : i32
    %c0_i32_1 = arith.constant 0 : i32
    %c0_i32_2 = arith.constant 0 : i32
    return %c0_i32, %c0_i32_0, %c0_i32_1 : i32, i32, i32
  }
  func.func @transform_3(%arg0: i32) -> (i32, i32) {
    %c0_i32 = arith.constant 0 : i32
    %c0_i32_0 = arith.constant 0 : i32
    return %arg0, %c0_i32 : i32, i32
  }
}

module attributes {stable_mosaic.version = 11 : i64} {
  func.func @kernel(%arg0: i32, %arg1: memref<128x128xf32, #tpu.memory_space<vmem>>, %arg2: memref<32x128xf32, #tpu.memory_space<vmem>>, %arg3: memref<3x32x32xf32, #tpu.memory_space<vmem>>, %arg4: memref<32x128xf32, #tpu.memory_space<vmem>>) attributes {dimension_semantics = [#tpu.dimension_semantics<parallel>], iteration_bounds = array<i64: 2>, scalar_prefetch = 0 : i64, scratch_operands = 0 : i64, tpu.core_type = #tpu.core_type<tc>, window_params = [{pipeline_mode = #tpu.pipeline_mode<synchronous>, transform_indices = @transform_0, window_bounds = array<i64: 128, 128>}, {transform_indices = @transform_1, window_bounds = array<i64: 32, 128>}, {pipeline_mode = #tpu.pipeline_mode<synchronous>, transform_indices = @transform_2, window_bounds = array<i64: 3, 32, 32>}, {transform_indices = @transform_3, window_bounds = array<i64: 32, 128>}]} {
    %c0 = arith.constant 0 : index
    %c0_0 = arith.constant 0 : index
    %0 = vector.load %arg1[%c0, %c0_0] : memref<128x128xf32, #tpu.memory_space<vmem>>, vector<128x128xf32>
    %c0_1 = arith.constant 0 : index
    %c0_2 = arith.constant 0 : index
    %1 = vector.load %arg2[%c0_1, %c0_2] : memref<32x128xf32, #tpu.memory_space<vmem>>, vector<32x128xf32>
    %c0_3 = arith.constant 0 : index
    %c0_4 = arith.constant 0 : index
    %c0_5 = arith.constant 0 : index
    %2 = vector.load %arg3[%c0_3, %c0_4, %c0_5] : memref<3x32x32xf32, #tpu.memory_space<vmem>>, vector<1x32x32xf32>
    %3 = vector.shape_cast %2 : vector<1x32x32xf32> to vector<32x32xf32>
    %cst = arith.constant dense<0.000000e+00> : vector<32x128xf32>
    %4 = tpu.matmul %3, %1, %cst {dimension_numbers = #tpu.dot_dimension_numbers<[1], [0], [0], [1], [0, 0, 1, 1], [], []>} : vector<32x32xf32>, vector<32x128xf32>, vector<32x128xf32> -> vector<32x128xf32>
    %cst_6 = arith.constant dense<0.000000e+00> : vector<32x128xf32>
    %5 = tpu.matmul %1, %0, %cst_6 {dimension_numbers = #tpu.dot_dimension_numbers<[1], [0], [0], [1], [0, 0, 1, 1], [], []>} : vector<32x128xf32>, vector<128x128xf32>, vector<32x128xf32> -> vector<32x128xf32>
    %c1 = arith.constant 1 : index
    %c0_7 = arith.constant 0 : index
    %c0_8 = arith.constant 0 : index
    %6 = vector.load %arg3[%c1, %c0_7, %c0_8] : memref<3x32x32xf32, #tpu.memory_space<vmem>>, vector<1x32x32xf32>
    %7 = vector.shape_cast %6 : vector<1x32x32xf32> to vector<32x32xf32>
    %cst_9 = arith.constant dense<0.000000e+00> : vector<32x128xf32>
    %8 = tpu.matmul %7, %5, %cst_9 {dimension_numbers = #tpu.dot_dimension_numbers<[1], [0], [0], [1], [0, 0, 1, 1], [], []>} : vector<32x32xf32>, vector<32x128xf32>, vector<32x128xf32> -> vector<32x128xf32>
    %9 = arith.addf %4, %8 : vector<32x128xf32>
    %cst_10 = arith.constant dense<0.000000e+00> : vector<32x128xf32>
    %10 = tpu.matmul %5, %0, %cst_10 {dimension_numbers = #tpu.dot_dimension_numbers<[1], [0], [0], [1], [0, 0, 1, 1], [], []>} : vector<32x128xf32>, vector<128x128xf32>, vector<32x128xf32> -> vector<32x128xf32>
    %c2 = arith.constant 2 : index
    %c0_11 = arith.constant 0 : index
    %c0_12 = arith.constant 0 : index
    %11 = vector.load %arg3[%c2, %c0_11, %c0_12] : memref<3x32x32xf32, #tpu.memory_space<vmem>>, vector<1x32x32xf32>
    %12 = vector.shape_cast %11 : vector<1x32x32xf32> to vector<32x32xf32>
    %cst_13 = arith.constant dense<0.000000e+00> : vector<32x128xf32>
    %13 = tpu.matmul %12, %10, %cst_13 {dimension_numbers = #tpu.dot_dimension_numbers<[1], [0], [0], [1], [0, 0, 1, 1], [], []>} : vector<32x32xf32>, vector<32x128xf32>, vector<32x128xf32> -> vector<32x128xf32>
    %14 = arith.addf %9, %13 : vector<32x128xf32>
    %c0_14 = arith.constant 0 : index
    %c0_15 = arith.constant 0 : index
    %15 = vector.load %arg4[%c0_14, %c0_15] : memref<32x128xf32, #tpu.memory_space<vmem>>, vector<32x128xf32>
    tpu.vector_store %arg4[%c0_14, %c0_15], %14 {strides = array<i32>} : memref<32x128xf32, #tpu.memory_space<vmem>>, vector<32x128xf32>,
    return
  }
  func.func @transform_0(%arg0: i32) -> (i32, i32) {
    %c0_i32 = arith.constant 0 : i32
    %c0_i32_0 = arith.constant 0 : i32
    %c0_i32_1 = arith.constant 0 : i32
    return %c0_i32, %c0_i32_0 : i32, i32
  }
  func.func @transform_1(%arg0: i32) -> (i32, i32) {
    %c0_i32 = arith.constant 0 : i32
    %c0_i32_0 = arith.constant 0 : i32
    return %arg0, %c0_i32 : i32, i32
  }
  func.func @transform_2(%arg0: i32) -> (i32, i32, i32) {
    %c0_i32 = arith.constant 0 : i32
    %c0_i32_0 = arith.constant 0 : i32
    %c0_i32_1 = arith.constant 0 : i32
    %c0_i32_2 = arith.constant 0 : i32
    return %c0_i32, %c0_i32_0, %c0_i32_1 : i32, i32, i32
  }
  func.func @transform_3(%arg0: i32) -> (i32, i32) {
    %c0_i32 = arith.constant 0 : i32
    %c0_i32_0 = arith.constant 0 : i32
    return %arg0, %c0_i32 : i32, i32
  }
}

</mosaic_0001>

<bundles_post_ra>
// kernel: tpu_custom_call.1
= control target key start
LH: loop header
LB: loop body
LE: loop exit
PB: predicated region body
PF: predicated region fallthrough
CT: control target
= control target key end

     0   :  { %8 = vsyncpa [#allocation3], 0  ;;  %s1664_s0 = inlined_call_operand.hbm [shape: f32[128,128], index: 0, kind: input, shape index: {}]   ;;  %s1665_s1 = inlined_call_operand.hbm [shape: f32[64,128], index: 1, kind: input, shape index: {}]   ;;  %s1666_s2 = inlined_call_operand.hbm [shape: f32[3,32,32], index: 2, kind: input, shape index: {}]   ;;  %s1667_s3 = inlined_call_operand.hbm [shape: f32[64,128], index: 3, kind: output, shape index: {}]  }
   0x1   :  { %9 = vsyncpa [#allocation6], 0 }
   0x2   :  { %11 = vsyncpa [#allocation6 + $0x1], 0 }
   0x3   :  { %12 = vsyncpa [#allocation4], 0 }
   0x4   :  { %14 = vsyncpa [#allocation4 + $0x1], 0  ;;  %s1407_s12 = smov 0   ;;  %s1409_s13 = smov 0  }
   0x5   :  { %s1411_s14 = smov 0   ;;  %s1413_s15 = smov 0  }
   0x6 LB: > { %s1428_s16 = sadd.s32 4294967295, %s1377_s15   ;;  %s832_s17 = sadd.s32 4294967294, %s1377_s15   ;;  %s1377_s15 = sphi %s1413_s15, %s1695_s15   ;;  %s1373_s14 = sphi %s1411_s14, %s1694_s14   ;;  %s1369_s13 = sphi %s1409_s13, %s1693_s13   ;;  %s1365_s12 = sphi %s1407_s12, %s1692_s12  }
   0x7   : > { %s1432_s18 = sadd.s32 1, %s1377_s15   ;;  %s48_s19 = sadd.s32 1, %s1373_s14 }
   0x8   : > { %s45_s20 = ssub.s32 %s1377_s15, %s1432_s18  ;;  %p55_p0 = scmp.ne.s32.totalorder %s1373_s14, %s1369_s13 }
   0x9   : > { %p46_p1 = scmp.eq.s32.totalorder %s45_s20, 0  ;;  %p56_p2 = scmp.eq.s32.totalorder %s1377_s15, 0 }
   0xa   : > { %p61_p3 = scmp.ne.s32.totalorder %s1369_s13, %s1365_s12  ;;  %p1669_p4 = scmp.eq.s32.totalorder %s1428_s16, 0 }
   0xb   : > { %s1444_s21 = scalar_select %p46_p1, %s1373_s14, %s48_s19  }
   0xc   : > { %p1446_p5 = por %p56_p2, %p55_p0  ;;  %p1452_p6 = por %p1669_p4, %p61_p3 }
   0xd   : > { %p106_p7 = scmp.eq.s32.totalorder %s1428_s16, 1  ;;  %p112_p8 = scmp.eq.s32.totalorder %s832_s17, 1 }
   0xe   : > { %s1673_s22 = scalar_select %p1446_p5, 1, 0 }
   0xf   : > { %s1674_s23 = scalar_select %p1452_p6, 1, 0 }
  0x10   : > { %p833_p9 = scmp.ge.s32.totalorder %s1377_s15, 1  ;;  %p119_p10 = scmp.lt.s32.totalorder %s1377_s15, 3 }
  0x11   : > { %p1459_p11 = por %p106_p7, %p55_p0  ;;  %p1463_p12 = por %p112_p8, %p61_p3 }
  0x12   : > { %p1467_p13 = pnand %p833_p9, %p119_p10  ;;  %s1379_s27 = smov [#allocation7]  }
  0x13   : > { %s1675_s24 = scalar_select %p1459_p11, 1, 0 }
  0x14   : > { %s1676_s25 = scalar_select %p1463_p12, 1, 0 }
  0x15   : > { %s1677_s26 = scalar_select %p1467_p13, 1, 0 }
  0x16   : > { %p1158_p1 = pneg %p1467_p13  ;;  %s144_s28 = sshll.u32 %s1379_s27, 4  ;;  %s145_s28 = int_to_ptr.vmem [resolvable:$true] %s144_s28 }
  0x17   : > { %s1380_s30 = smov [#allocation2]   ;;  %s1217_s7 = scalar_lea.hbm %s1666_s2, 1536 }
  0x18   : > { %p1476_p6 = pnand %p1158_p1, %p1669_p4  ;;  %s131_s4 = sshll.u32 %s1380_s30, 4  ;;  %s132_s4 = int_to_ptr.vmem [resolvable:$true] %s131_s4 }
  0x19   : > { %p1218_p3 = scmp.ne.s32.totalorder %s1666_s2, %s1217_s7  ;;  %p1224_p10 = scmp.lt.u32.totalorder %s1217_s7, %s1666_s2 }
  0x1a   : > { %p1219_p7 = pneg %p1476_p6 }
  0x1c   : > { %p1220_p8 = pnand %p1219_p7, %p1218_p3 }
  0x1e   : > { %p1221_p9 = pneg %p1220_p8 }
  0x20   : > { %p1226_p1 = pnand %p1224_p10, %p1221_p9 }
  0x22   : > { %1229 = shalt.err (!%p1226_p1)
}
  0x23   : > { %s1230_s17 = scalar_lea.vmem %s145_s28, 1536  ;;  %p1238_p12 = scmp.lt.s32.totalorder %s145_s28, %s145_s28 }
  0x24   : > { %p1231_p2 = scmp.ne.s32.totalorder %s145_s28, %s1230_s17  ;;  %p1239_p11 = scmp.lt.s32.totalorder %s1230_s17, %s1230_s17 }
  0x26   : > { %p1233_p4 = pnand %p1231_p2, %p1219_p7  ;;  %p1240_p13 = por %p1239_p11, %p1238_p12 }
  0x28   : > { %p1234_p0 = pneg %p1233_p4 }
  0x2a   : > { %p1241_p5 = pnand %p1240_p13, %p1234_p0 }
  0x2c   : > { %1244 = shalt.err (!%p1241_p5)
}
  0x2d   : > { %s1381_s19 = smov 128   ;;  %s1382_s20 = smov 8  }
  0x2e   : > { %1164 = dma.hbm_to_vmem [thread:$0]  (!%p1476_p6), %s1666_s2, 1536, %s145_s28, [#allocation6], %s1381_s19, %s1381_s19, %s1382_s20  }
  0x2f   : > { %p1679_p4 = scmp.ne.s32.totalorder %s1673_s22, 0  ;;  %p1680_p2 = scmp.lt.s32.totalorder %s1377_s15, 2 }
  0x30   : > { %s1245_s8 = scalar_lea.hbm %s1664_s0, 2048 }
  0x31   : > { %p1510_p3 = pnand %p1680_p2, %p1679_p4  ;;  %p1246_p5 = scmp.ne.s32.totalorder %s1664_s0, %s1245_s8 }
  0x32   : > { %p1252_p13 = scmp.lt.u32.totalorder %s1245_s8, %s1664_s0 }
  0x33   : > { %s1681_s5 = scalar_select %p1510_p3, 1, 0 }
  0x34   : > { %p1248_p11 = pnand %p1246_p5, %p1219_p7 }
  0x36   : > { %p1249_p12 = pneg %p1248_p11 }
  0x38   : > { %p1254_p0 = pnand %p1252_p13, %p1249_p12 }
  0x3a   : > { %1257 = shalt.err (!%p1254_p0)
}
  0x3b   : > { %s1258_s11 = scalar_lea.vmem %s132_s4, 2048  ;;  %p1266_p1 = scmp.lt.s32.totalorder %s132_s4, %s132_s4 }
  0x3c   : > { %p1259_p8 = scmp.ne.s32.totalorder %s132_s4, %s1258_s11  ;;  %p1267_p4 = scmp.lt.s32.totalorder %s1258_s11, %s1258_s11 }
  0x3e   : > { %p1261_p9 = pnand %p1259_p8, %p1219_p7  ;;  %p1268_p2 = por %p1267_p4, %p1266_p1 }
  0x40   : > { %p1262_p10 = pneg %p1261_p9 }
  0x42   : > { %p1269_p3 = pnand %p1268_p2, %p1262_p10 }
  0x44   : > { %1272 = shalt.err (!%p1269_p3)
}
  0x45   : > { %1161 = dma.hbm_to_vmem [thread:$0]  (!%p1476_p6), %s1664_s0, 2048, %s132_s4, [#allocation3], %s1381_s19, %s1381_s19, %s1382_s20  }
  0x46   : > { %s158_s30 = sand.u32 1, %s1377_s15   ;;  %s160_s6 = sand.u32 1, %s1373_s14  }
  0x47   : > { %s837_s7 = sshll.u32 %s160_s6, 5  ;;  %s862_s8 = sshll.u32 %s1377_s15, 9 }
  0x48   : > { %s1543_s29 = scalar_lea.hbm %s1665_s1, %s862_s8  ;;  %s162_s28 = scalar_lea.vmem [#allocation5], %s837_s7 }
  0x49   : > { %s169_s22 = sshll.u32 %s162_s28, 4  ;;  %s1547_s11 = scalar_lea.sflag [#allocation6], %s158_s30  ;;  %s1545_s22 = int_to_ptr.vmem [resolvable:$true] %s169_s22 }
  0x4a   : > { %s1273_s4 = scalar_lea.hbm %s1543_s29, 512  ;;  %p1682_p7 = scmp.ne.s32.totalorder %s1681_s5, 0 }
  0x4b   : > { %p1274_p6 = scmp.ne.s32.totalorder %s1543_s29, %s1273_s4  ;;  %s1278_s6 = scalar_lea.hbm %s1665_s1, 1024 }
  0x4c   : > { %p1275_p3 = pneg %p1682_p7  ;;  %p1279_p12 = scmp.lt.u32.totalorder %s1543_s29, %s1665_s1 }
  0x4d   : > { %p1280_p13 = scmp.lt.u32.totalorder %s1278_s6, %s1273_s4  ;;  %p1282_p8 = scmp.lt.u32.totalorder %s1273_s4, %s1543_s29 }
  0x4e   : > { %p1276_p5 = pnand %p1275_p3, %p1274_p6 }
  0x4f   : > { %p1281_p0 = por %p1280_p13, %p1279_p12 }
  0x50   : > { %p1277_p11 = pneg %p1276_p5 }
  0x51   : > { %p1283_p9 = por %p1282_p8, %p1281_p0 }
  0x53   : > { %p1284_p10 = pnand %p1283_p9, %p1277_p11 }
  0x55   : > { %1287 = shalt.err (!%p1284_p10)
}
  0x56   : > { %s1288_s30 = scalar_lea.vmem %s1545_s22, 512  ;;  %s1383_s7 = smov [#allocation5]  }
  0x57   : > { %p1289_p1 = scmp.ne.s32.totalorder %s1545_s22, %s1288_s30  ;;  %s1293_s10 = sshll.u32 %s1383_s7, 4  ;;  %s1294_s10 = int_to_ptr.vmem [resolvable:$false] %s1293_s10 }
  0x58   : > { %s1295_s28 = scalar_lea.vmem %s1294_s10, 1024  ;;  %p1296_p6 = scmp.lt.s32.totalorder %s1545_s22, %s1294_s10 }
  0x59   : > { %p1291_p4 = pnand %p1289_p1, %p1275_p3  ;;  %p1297_p5 = scmp.lt.s32.totalorder %s1295_s28, %s1288_s30 }
  0x5b   : > { %p1292_p2 = pneg %p1291_p4  ;;  %p1298_p12 = por %p1297_p5, %p1296_p6 }
  0x5d   : > { %p1299_p13 = pnand %p1298_p12, %p1292_p2 }
  0x5f   : > { %1302 = shalt.err (!%p1299_p13)
}
  0x60   : > { %1168 = dma.hbm_to_vmem [thread:$0]  (!%p1682_p7), %s1543_s29, 512, %s1545_s22, %s1547_s11, %s1381_s19, %s1381_s19, %s1382_s20  }
  0x61   : > { %p1683_p3 = scmp.ne.s32.totalorder %s1677_s26, 0 }
  0x62   : > { %p1684_p11 = scmp.eq.s32.totalorder (!%p1683_p3), %s1428_s16, 0 }
  0x63   : > { %181 = sbr.rel (%p1683_p3) target bundleno = 817 (0x331), region = 32 }
  0x6a   : > { %1348 = dma.done.wait (%p1684_p11), [#allocation3], 2048   ;;  %p1685_p0 = pmov %p1684_p11 }
  0x6b   : > { %s187_s5 = sand.u32 1, %s1428_s16   ;;  %s189_s4 = sand.u32 1, %s1369_s13  }
  0x6c   : > { %1350 = vsyncadd (%p1685_p0), [#allocation3], 4294965248  ;;  %s1588_s17 = sshll.u32 %s189_s4, 5  ;;  %s188_s19 = scalar_lea.sflag [#allocation6], %s187_s5 }
  0x6d   : > { %s191_s20 = scalar_lea.vmem [#allocation5], %s1588_s17  ;;  %p1686_p7 = scmp.ne.s32.totalorder %s1674_s23, 0 }
  0x6f   : > { %1352 = dma.done.wait (%p1686_p7), %s188_s19, 512  }
  0x70   : > { %1354 = vsyncadd (%p1686_p7), %s188_s19, 4294966784  ;;  %p1687_p8 = pmov %p1685_p0 }
  0x71   : > { %p1688_p9 = pmov %p1685_p0 }
  0x72   : > { %1356 = dma.done.wait (%p1687_p8), [#allocation6], 1536  }
  0x73   : > { %1358 = vsyncadd (%p1688_p9), [#allocation6], 4294965760  ;;  %v220_v0 = vld [vmem:[#allocation2] sm:$0xff]  ;;  %v221_v1 = vld [vmem:[#allocation2 + $0x8] sm:$0xff]  ;;  %vm334_vm0 = vcmask 261120   ;;  %s217_s23 = scalar_lea.vmem [#allocation8], %s1588_s17 }
  0x74   : > { %v222_v2 = vld [vmem:[#allocation2 + $0x10] sm:$0xff]  ;;  %v1046_v3 = vpack.c.bf16 %v221_v1, %v220_v0  ;;  %v223_v4 = vld [vmem:[#allocation2 + $0x18] sm:$0xff]  ;;  %v224_v6 = vld [vmem:[#allocation2 + $0x20] sm:$0xff]  ;;  %s738_s26 = sshll.u32 %s217_s23, 4  ;;  %s863_s29 = sshll.u32 %s1428_s16, 9  ;;  %s1613_s26 = int_to_ptr.vmem [resolvable:$true] %s738_s26 }
  0x75   : > { %v1050_v5 = vpack.c.bf16 %v223_v4, %v222_v2  ;;  %v225_v7 = vld [vmem:[#allocation2 + $0x28] sm:$0xff]  ;;  %v226_v8 = vld [vmem:[#allocation2 + $0x30] sm:$0xff]  ;;  %v227_v10 = vld [vmem:[#allocation2 + $0x38] sm:$0xff]  ;;  %s1618_s27 = scalar_lea.hbm %s1667_s3, %s863_s29  ;;  %s1622_s16 = scalar_lea.sflag [#allocation4], %s189_s4 }
  0x76   : > { %1047 = vmatprep.subr.bf16.mxu0 %v1046_v3  ;;  %v1054_v9 = vpack.c.bf16 %v225_v7, %v224_v6  ;;  %v236_v11 = vld [vmem:[%s191_s20] sm:$0xff]  ;;  %v237_v12 = vld [vmem:[%s191_s20 + $0x8] sm:$0xff]  ;;  %v238_v13 = vld [vmem:[%s191_s20 + $0x10] sm:$0xff]  ;;  %v1058_v18 = vpack.c.bf16 %v227_v10, %v226_v8  ;;  %s1303_s6 = scalar_lea.vmem %s1613_s26, 512  ;;  %p1689_p1 = scmp.ne.s32.totalorder %s1675_s24, 0 }
  0x77   : > { %1049 = vmatpush3.bf16.msra.mxu0 %v1046_v3  ;;  %960 = vmatprep.mubr.f32.mxu0 %v236_v11  ;;  %v239_v14 = vld [vmem:[%s191_s20 + $0x18] sm:$0xff]  ;;  %v1086_v15 = vpack.c.bf16 %v237_v12, %v236_v11  ;;  %v240_v16 = vld [vmem:[#allocation7] sm:$0xff]  ;;  %v229_v20 = vld [vmem:[#allocation2 + $0x48] sm:$0xff]  ;;  %p1304_p10 = scmp.ne.s32.totalorder %s1613_s26, %s1303_s6  ;;  %s1384_s8 = smov [#allocation8]  }
  0x78   : > { %1051 = vmatprep.subr.bf16.mxu0 %v1050_v5  ;;  %v1090_v17 = vpack.c.bf16 %v239_v14, %v238_v13  ;;  %988 = vmatprep.mubr.msk.f32.mxu1 %vm334_vm0, %v240_v16  ;;  %v228_v19 = vld [vmem:[#allocation2 + $0x40] sm:$0xff]  ;;  %v241_v22 = vld [vmem:[#allocation7 + $0x8] sm:$0xff]  ;;  %v230_v23 = vld [vmem:[#allocation2 + $0x50] sm:$0xff]  ;;  %s1307_s9 = sshll.u32 %s1384_s8, 4  ;;  %s1308_s9 = int_to_ptr.vmem [resolvable:$false] %s1307_s9 }
  0x79   : > { %1087 = vmatprep.subr.bf16.mxu1 %v1086_v15  ;;  %v1062_v21 = vpack.c.bf16 %v229_v20, %v228_v19  ;;  %v231_v24 = vld [vmem:[#allocation2 + $0x58] sm:$0xff]  ;;  %v242_v25 = vld [vmem:[#allocation7 + $0x10] sm:$0xff]  ;;  %v232_v28 = vld [vmem:[#allocation2 + $0x60] sm:$0xff]  ;;  %p1305_p4 = pnand %p1304_p10, %p1689_p1  ;;  %s1309_s30 = scalar_lea.vmem %s1308_s9, 1024 }
  0x7a   : > { %1089 = vmatpush3.bf16.msra.mxu1 %v1086_v15  ;;  %v1066_v26 = vpack.c.bf16 %v231_v24, %v230_v23  ;;  %v243_v27 = vld [vmem:[#allocation7 + $0x18] sm:$0xff]  ;;  %v233_v29 = vld [vmem:[#allocation2 + $0x68] sm:$0xff]  ;;  %v234_v31 = vld [vmem:[#allocation2 + $0x70] sm:$0xff]  ;;  %p1310_p6 = scmp.lt.s32.totalorder %s1613_s26, %s1308_s9  ;;  %p1311_p5 = scmp.lt.s32.totalorder %s1309_s30, %s1303_s6 }
  0x7b   : > { %1053 = vmatpush3.bf16.msra.mxu0 %v1050_v5  ;;  %1091 = vmatprep.subr.bf16.mxu1 %v1090_v17  ;;  %v1070_v30 = vpack.c.bf16 %v233_v29, %v232_v28  ;;  %v235_v32 = vld [vmem:[#allocation2 + $0x78] sm:$0xff]  ;;  %v330_v34 = vld [vmem:[#allocation7 + $0x20] sm:$0xff]  ;;  %v331_v43 = vld [vmem:[#allocation7 + $0x28] sm:$0xff]  ;;  %p1306_p2 = pneg %p1305_p4 }
  0x7c   : > { %1055 = vmatprep.subr.bf16.mxu0 %v1054_v9  ;;  %v1074_v33 = vpack.c.bf16 %v235_v32, %v234_v31  ;;  %v332_v44 = vld [vmem:[#allocation7 + $0x30] sm:$0xff]  ;;  %v333_v45 = vld [vmem:[#allocation7 + $0x38] sm:$0xff]  ;;  %v615_v46 = vld [vmem:[#allocation7 + $0x40] sm:$0xff]  ;;  %p1312_p12 = por %p1311_p5, %p1310_p6 }
  0x7d   : > { %v617_v47 = vld [vmem:[#allocation7 + $0x50] sm:$0xff]  ;;  %v616_v55 = vld [vmem:[#allocation7 + $0x48] sm:$0xff]  ;;  %v618_v56 = vld [vmem:[#allocation7 + $0x58] sm:$0xff] }
  0x7e   : > { %1093 = vmatpush3.bf16.msra.mxu1 %v1090_v17  ;;  %p1313_p13 = pnand %p1312_p12, %p1306_p2 }
  0x7f   : > { %1057 = vmatpush3.bf16.msra.mxu0 %v1054_v9  ;;  %1095 = vmatprep.subr.bf16.mxu1 %v1046_v3 }
  0x80   : > { %1059 = vmatprep.subr.bf16.mxu0 %v1058_v18 }
  0x81   : > { %989 = vmatmul.mubr.msk.f32.vlgmr.msra.gmra.mrb[0].mxu1 %vm334_vm0, %v241_v22 }
  0x82   : > { %1097 = vmatpush3.bf16.msra.mxu1 %v1046_v3  ;;  %991 = vmatprep.mubr.msk.f32.mxu1 %vm334_vm0, %v242_v25 }
  0x83   : > { %1061 = vmatpush3.bf16.msra.mxu0 %v1058_v18  ;;  %1099 = vmatprep.subr.bf16.mxu1 %v1050_v5 }
  0x84   : > { %1063 = vmatprep.subr.bf16.mxu0 %v1062_v21 }
  0x85   : > { %992 = vmatmul.mubr.msk.f32.gmra.mrb[2].mxu1 %vm334_vm0, %v243_v27 }
  0x86   : > { %1101 = vmatpush3.bf16.msra.mxu1 %v1050_v5 }
  0x87   : > { %1065 = vmatpush3.bf16.msra.mxu0 %v1062_v21  ;;  %1103 = vmatprep.subr.bf16.mxu1 %v1054_v9 }
  0x88   : > { %1067 = vmatprep.subr.bf16.mxu0 %v1066_v26 }
  0x8a   : > { %1105 = vmatpush3.bf16.msra.mxu1 %v1054_v9 }
  0x8b   : > { %1069 = vmatpush3.bf16.msra.mxu0 %v1066_v26  ;;  %1107 = vmatprep.subr.bf16.mxu1 %v1058_v18 }
  0x8c   : > { %1071 = vmatprep.subr.bf16.mxu0 %v1070_v30 }
  0x8e   : > { %1109 = vmatpush3.bf16.msra.mxu1 %v1058_v18 }
  0x8f   : > { %1073 = vmatpush3.bf16.msra.mxu0 %v1070_v30  ;;  %1111 = vmatprep.subr.bf16.mxu1 %v1062_v21 }
  0x90   : > { %1075 = vmatprep.subr.bf16.mxu0 %v1074_v33 }
  0x92   : > { %1113 = vmatpush3.bf16.msra.mxu1 %v1062_v21 }
  0x93   : > { %1077 = vmatpush3.bf16.msra.mxu0 %v1074_v33  ;;  %1115 = vmatprep.subr.bf16.mxu1 %v1066_v26 }
  0x96   : > { %961 = vmatmul.mubr.f32.vlgmr.msra.gmra.mrb[0].mxu0 %v237_v12  ;;  %1117 = vmatpush3.bf16.msra.mxu1 %v1066_v26 }
  0x97   : > { %963 = vmatprep.mubr.f32.mxu0 %v238_v13  ;;  %1119 = vmatprep.subr.bf16.mxu1 %v1070_v30 }
  0x9a   : > { %964 = vmatmul.mubr.f32.gmra.mrb[2].mxu0 %v239_v14  ;;  %1121 = vmatpush3.bf16.msra.mxu1 %v1070_v30 }
  0x9b   : > { %1123 = vmatprep.subr.bf16.mxu1 %v1074_v33  ;;  %974 = vmatprep.mubr.msk.f32.mxu0 %vm334_vm0, %v330_v34 }
  0x9e   : > { %1125 = vmatpush3.bf16.msra.mxu1 %v1074_v33 }
 0x154   : > { %v990_v35 = vpop.f32.mrb[0].mxu1 }
 0x155   : > { %v510_v36 = vpop.f32.mrb[1].mxu1 }
 0x169   : > { %v962_v37 = vpop.f32.mrb[0].mxu0 }
 0x16a   : > { %v310_v38 = vpop.f32.mrb[1].mxu0 }
 0x16b   : > { %v1078_v39 = vpack.c.bf16 %v962_v37, %v310_v38  ;;  %1026 = vmatprep.mubr.f32.mxu1 %v310_v38 }
 0x16c   : > { %1027 = vmatmul.mubr.f32.vlgmr.msra.gmra.mrb[4].mxu1 %v962_v37 }
 0x16d   : > { %v965_v40 = vpop.f32.mrb[2].mxu0  ;;  %1079 = vmatprep.subr.bf16.mxu0 %v1078_v39 }
 0x16e   : > { %v320_v41 = vpop.f32.mrb[3].mxu0  ;;  %1081 = vmatpush3.bf16.msra.mxu0 %v1078_v39 }
 0x16f   : > { %v1082_v42 = vpack.c.bf16 %v965_v40, %v320_v41  ;;  %1029 = vmatprep.mubr.f32.mxu1 %v320_v41 }
 0x170   : > { %1030 = vmatmul.mubr.f32.gmra.mrb[6].mxu1 %v965_v40 }
 0x171   : > { %1083 = vmatprep.subr.bf16.mxu0 %v1082_v42  ;;  %1043 = vmatprep.mubr.msk.f32.mxu1 %vm334_vm0, %v617_v47 }
 0x172   : > { %1085 = vmatpush3.bf16.msra.mxu0 %v1082_v42 }
 0x175   : > { %975 = vmatmul.mubr.msk.f32.vlgmr.msra.gmra.mrb[4].mxu0 %vm334_vm0, %v331_v43 }
 0x176   : > { %977 = vmatprep.mubr.msk.f32.mxu0 %vm334_vm0, %v332_v44 }
 0x179   : > { %978 = vmatmul.mubr.msk.f32.gmra.mrb[6].mxu0 %vm334_vm0, %v333_v45 }
 0x17a   : > { %1040 = vmatprep.mubr.msk.f32.mxu0 %vm334_vm0, %v615_v46 }
 0x23f   : > { %v1028_v48 = vpop.f32.mrb[4].mxu1 }
 0x240   : > { %v595_v49 = vpop.f32.mrb[5].mxu1 }
 0x241   : > { %v1126_v50 = vpack.c.bf16 %v1028_v48, %v595_v49 }
 0x243   : > { %v1031_v51 = vpop.f32.mrb[6].mxu1  ;;  %1127 = vmatprep.subr.bf16.mxu0 %v1126_v50  ;;  %1134 = vmatprep.subr.bf16.mxu1 %v1126_v50 }
 0x244   : > { %v605_v52 = vpop.f32.mrb[7].mxu1  ;;  %1129 = vmatpush3.bf16.msra.mxu0 %v1126_v50  ;;  %1136 = vmatpush3.bf16.msra.mxu1 %v1126_v50 }
 0x245   : > { %v1130_v53 = vpack.c.bf16 %v1031_v51, %v605_v52 }
 0x247   : > { %1131 = vmatprep.subr.bf16.mxu0 %v1130_v53  ;;  %1135 = vmatprep.subr.bf16.mxu1 %v1130_v53 }
 0x248   : > { %v976_v54 = vpop.f32.mrb[4].mxu0  ;;  %1133 = vmatpush3.bf16.msra.mxu0 %v1130_v53  ;;  %1137 = vmatpush3.bf16.msra.mxu1 %v1130_v53 }
 0x249   : > { %v516_v57 = vadd.f32 %v990_v35, %v976_v54  ;;  %v413_v58 = vpop.f32.mrb[5].mxu0 }
 0x24a   : > { %v511_v59 = vadd.f32 %v510_v36, %v413_v58 }
 0x24b   : > { %1041 = vmatmul.mubr.msk.f32.vlgmr.msra.gmra.mrb[8].mxu0 %vm334_vm0, %v616_v55  ;;  %1044 = vmatmul.mubr.msk.f32.vlgmr.msra.gmra.mrb[2].mxu1 %vm334_vm0, %v618_v56 }
 0x24c   : > { %v979_v60 = vpop.f32.mrb[6].mxu0 }
 0x24d   : > { %v423_v61 = vpop.f32.mrb[7].mxu0 }
 0x31e   : > { %v1042_v62 = vpop.f32.mrb[8].mxu0  ;;  %v1045_v63 = vpop.f32.mrb[2].mxu1 }
 0x31f   : > { %v717_v0 = vadd.f32 %v1042_v62, %v516_v57  ;;  %v1142_v1 = vadd.f32 %v1045_v63, %v979_v60  ;;  %v697_v2 = vpop.f32.mrb[9].mxu0  ;;  %v707_v3 = vpop.f32.mrb[3].mxu1 }
 0x320   : > { %v716_v4 = vadd.f32 %v697_v2, %v511_v59  ;;  %v1143_v5 = vadd.f32 %v707_v3, %v423_v61 }
 0x321   : > { %721 = vst [vmem:[%s217_s23 + $0x8] sm:$0xff] %v717_v0  ;;  %723 = vst [vmem:[%s217_s23 + $0x18] sm:$0xff] %v1142_v1 }
 0x322   : > { %720 = vst [vmem:[%s217_s23] sm:$0xff] %v716_v4  ;;  %722 = vst [vmem:[%s217_s23 + $0x10] sm:$0xff] %v1143_v5 }
 0x323   : > { %1316 = shalt.err (!%p1313_p13)
}
 0x324   : > { %s1317_s7 = scalar_lea.hbm %s1618_s27, 512  ;;  %s1321_s5 = scalar_lea.hbm %s1667_s3, 1024 }
 0x325   : > { %p1318_p3 = scmp.ne.s32.totalorder %s1618_s27, %s1317_s7  ;;  %p1322_p7 = scmp.lt.u32.totalorder %s1618_s27, %s1667_s3 }
 0x326   : > { %p1323_p8 = scmp.lt.u32.totalorder %s1321_s5, %s1317_s7  ;;  %p1325_p10 = scmp.lt.u32.totalorder %s1317_s7, %s1618_s27 }
 0x327   : > { %p1319_p11 = pnand %p1318_p3, %p1689_p1 }
 0x328   : > { %p1324_p9 = por %p1323_p8, %p1322_p7 }
 0x329   : > { %p1320_p0 = pneg %p1319_p11 }
 0x32a   : > { %p1326_p4 = por %p1325_p10, %p1324_p9 }
 0x32c   : > { %p1327_p2 = pnand %p1326_p4, %p1320_p0 }
 0x32e   : > { %1330 = shalt.err (!%p1327_p2)
}
 0x32f   : > { %s1385_s19 = smov 128   ;;  %s1386_s20 = smov 8  }
 0x330   : > { %1156 = dma.vmem_to_hbm [thread:$0]  (%p1689_p1), %s1613_s26, 512, %s1618_s27, %s1622_s16, %s1385_s19, %s1385_s19, %s1386_s20  }
 0x331 PF: > { %s753_s23 = sand.u32 1, %s1365_s12   ;;  %p1690_p6 = scmp.ne.s32.totalorder %s1676_s25, 0 }
 0x332   : > { %p1691_p5 = scmp.ge.s32.totalorder %s1377_s15, 2  ;;  %s754_s29 = scalar_lea.sflag [#allocation4], %s753_s23 }
 0x334   : > { %p1170_p12 = pnand %p1691_p5, %p1690_p6 }
 0x336   : > { %1360 = dma.done.wait (!%p1170_p12), %s754_s29, 512  }
 0x337   : > { %1362 = vsyncadd (!%p1170_p12), %s754_s29, 4294966784  ;;  %p17_p13 = scmp.ge.s32.totalorder %s1432_s18, 4   ;;  %s1692_s12 = smov %s1369_s13 }
 0x338   : > { %s1693_s13 = smov %s1373_s14  ;;  %s1694_s14 = smov %s1444_s21 }
 0x339   : > { %s1695_s15 = smov %s1432_s18  ;;  %19 = sbr.rel (!%p17_p13) target bundleno = 6 (0x6), region = 88 }
 0x340   :  { %759 = vsyncpa [#allocation3], 1 }
 0x341   :  { %761 = vsyncpa [#allocation3 + $0x1], 1 }
 0x342   :  { %762 = vsyncpa [#allocation6], 1 }
 0x343   :  { %764 = vsyncpa [#allocation6 + $0x1], 1 }
 0x344   :  { %765 = vsyncpa [#allocation4], 1 }
 0x345   :  { %767 = vsyncpa [#allocation4 + $0x1], 1 }

// kernel: tpu_custom_call.1
= control target key start
LH: loop header
LB: loop body
LE: loop exit
PB: predicated region body
PF: predicated region fallthrough
CT: control target
= control target key end

     0   :  { %8 = vsyncpa [#allocation3], 0  ;;  %s1664_s0 = inlined_call_operand.hbm [shape: f32[128,128], index: 0, kind: input, shape index: {}]   ;;  %s1665_s1 = inlined_call_operand.hbm [shape: f32[64,128], index: 1, kind: input, shape index: {}]   ;;  %s1666_s2 = inlined_call_operand.hbm [shape: f32[3,32,32], index: 2, kind: input, shape index: {}]   ;;  %s1667_s3 = inlined_call_operand.hbm [shape: f32[64,128], index: 3, kind: output, shape index: {}]  }
   0x1   :  { %9 = vsyncpa [#allocation6], 0 }
   0x2   :  { %11 = vsyncpa [#allocation6 + $0x1], 0 }
   0x3   :  { %12 = vsyncpa [#allocation4], 0 }
   0x4   :  { %14 = vsyncpa [#allocation4 + $0x1], 0  ;;  %s1407_s12 = smov 0   ;;  %s1409_s13 = smov 0  }
   0x5   :  { %s1411_s14 = smov 0   ;;  %s1413_s15 = smov 0  }
   0x6 LB: > { %s1428_s16 = sadd.s32 4294967295, %s1377_s15   ;;  %s832_s17 = sadd.s32 4294967294, %s1377_s15   ;;  %s1377_s15 = sphi %s1413_s15, %s1695_s15   ;;  %s1373_s14 = sphi %s1411_s14, %s1694_s14   ;;  %s1369_s13 = sphi %s1409_s13, %s1693_s13   ;;  %s1365_s12 = sphi %s1407_s12, %s1692_s12  }
   0x7   : > { %s1432_s18 = sadd.s32 1, %s1377_s15   ;;  %s48_s19 = sadd.s32 1, %s1373_s14 }
   0x8   : > { %s45_s20 = ssub.s32 %s1377_s15, %s1432_s18  ;;  %p55_p0 = scmp.ne.s32.totalorder %s1373_s14, %s1369_s13 }
   0x9   : > { %p46_p1 = scmp.eq.s32.totalorder %s45_s20, 0  ;;  %p56_p2 = scmp.eq.s32.totalorder %s1377_s15, 0 }
   0xa   : > { %p61_p3 = scmp.ne.s32.totalorder %s1369_s13, %s1365_s12  ;;  %p1669_p4 = scmp.eq.s32.totalorder %s1428_s16, 0 }
   0xb   : > { %s1444_s21 = scalar_select %p46_p1, %s1373_s14, %s48_s19  }
   0xc   : > { %p1446_p5 = por %p56_p2, %p55_p0  ;;  %p1452_p6 = por %p1669_p4, %p61_p3 }
   0xd   : > { %p106_p7 = scmp.eq.s32.totalorder %s1428_s16, 1  ;;  %p112_p8 = scmp.eq.s32.totalorder %s832_s17, 1 }
   0xe   : > { %s1673_s22 = scalar_select %p1446_p5, 1, 0 }
   0xf   : > { %s1674_s23 = scalar_select %p1452_p6, 1, 0 }
  0x10   : > { %p833_p9 = scmp.ge.s32.totalorder %s1377_s15, 1  ;;  %p119_p10 = scmp.lt.s32.totalorder %s1377_s15, 3 }
  0x11   : > { %p1459_p11 = por %p106_p7, %p55_p0  ;;  %p1463_p12 = por %p112_p8, %p61_p3 }
  0x12   : > { %p1467_p13 = pnand %p833_p9, %p119_p10  ;;  %s1379_s27 = smov [#allocation7]  }
  0x13   : > { %s1675_s24 = scalar_select %p1459_p11, 1, 0 }
  0x14   : > { %s1676_s25 = scalar_select %p1463_p12, 1, 0 }
  0x15   : > { %s1677_s26 = scalar_select %p1467_p13, 1, 0 }
  0x16   : > { %p1158_p1 = pneg %p1467_p13  ;;  %s144_s28 = sshll.u32 %s1379_s27, 4  ;;  %s145_s28 = int_to_ptr.vmem [resolvable:$true] %s144_s28 }
  0x17   : > { %s1380_s30 = smov [#allocation2]   ;;  %s1217_s7 = scalar_lea.hbm %s1666_s2, 1536 }
  0x18   : > { %p1476_p6 = pnand %p1158_p1, %p1669_p4  ;;  %s131_s4 = sshll.u32 %s1380_s30, 4  ;;  %s132_s4 = int_to_ptr.vmem [resolvable:$true] %s131_s4 }
  0x19   : > { %p1218_p3 = scmp.ne.s32.totalorder %s1666_s2, %s1217_s7  ;;  %p1224_p10 = scmp.lt.u32.totalorder %s1217_s7, %s1666_s2 }
  0x1a   : > { %p1219_p7 = pneg %p1476_p6 }
  0x1c   : > { %p1220_p8 = pnand %p1219_p7, %p1218_p3 }
  0x1e   : > { %p1221_p9 = pneg %p1220_p8 }
  0x20   : > { %p1226_p1 = pnand %p1224_p10, %p1221_p9 }
  0x22   : > { %1229 = shalt.err (!%p1226_p1)
}
  0x23   : > { %s1230_s17 = scalar_lea.vmem %s145_s28, 1536  ;;  %p1238_p12 = scmp.lt.s32.totalorder %s145_s28, %s145_s28 }
  0x24   : > { %p1231_p2 = scmp.ne.s32.totalorder %s145_s28, %s1230_s17  ;;  %p1239_p11 = scmp.lt.s32.totalorder %s1230_s17, %s1230_s17 }
  0x26   : > { %p1233_p4 = pnand %p1231_p2, %p1219_p7  ;;  %p1240_p13 = por %p1239_p11, %p1238_p12 }
  0x28   : > { %p1234_p0 = pneg %p1233_p4 }
  0x2a   : > { %p1241_p5 = pnand %p1240_p13, %p1234_p0 }
  0x2c   : > { %1244 = shalt.err (!%p1241_p5)
}
  0x2d   : > { %s1381_s19 = smov 128   ;;  %s1382_s20 = smov 8  }
  0x2e   : > { %1164 = dma.hbm_to_vmem [thread:$0]  (!%p1476_p6), %s1666_s2, 1536, %s145_s28, [#allocation6], %s1381_s19, %s1381_s19, %s1382_s20  }
  0x2f   : > { %p1679_p4 = scmp.ne.s32.totalorder %s1673_s22, 0  ;;  %p1680_p2 = scmp.lt.s32.totalorder %s1377_s15, 2 }
  0x30   : > { %s1245_s8 = scalar_lea.hbm %s1664_s0, 2048 }
  0x31   : > { %p1510_p3 = pnand %p1680_p2, %p1679_p4  ;;  %p1246_p5 = scmp.ne.s32.totalorder %s1664_s0, %s1245_s8 }
  0x32   : > { %p1252_p13 = scmp.lt.u32.totalorder %s1245_s8, %s1664_s0 }
  0x33   : > { %s1681_s5 = scalar_select %p1510_p3, 1, 0 }
  0x34   : > { %p1248_p11 = pnand %p1246_p5, %p1219_p7 }
  0x36   : > { %p1249_p12 = pneg %p1248_p11 }
  0x38   : > { %p1254_p0 = pnand %p1252_p13, %p1249_p12 }
  0x3a   : > { %1257 = shalt.err (!%p1254_p0)
}
  0x3b   : > { %s1258_s11 = scalar_lea.vmem %s132_s4, 2048  ;;  %p1266_p1 = scmp.lt.s32.totalorder %s132_s4, %s132_s4 }
  0x3c   : > { %p1259_p8 = scmp.ne.s32.totalorder %s132_s4, %s1258_s11  ;;  %p1267_p4 = scmp.lt.s32.totalorder %s1258_s11, %s1258_s11 }
  0x3e   : > { %p1261_p9 = pnand %p1259_p8, %p1219_p7  ;;  %p1268_p2 = por %p1267_p4, %p1266_p1 }
  0x40   : > { %p1262_p10 = pneg %p1261_p9 }
  0x42   : > { %p1269_p3 = pnand %p1268_p2, %p1262_p10 }
  0x44   : > { %1272 = shalt.err (!%p1269_p3)
}
  0x45   : > { %1161 = dma.hbm_to_vmem [thread:$0]  (!%p1476_p6), %s1664_s0, 2048, %s132_s4, [#allocation3], %s1381_s19, %s1381_s19, %s1382_s20  }
  0x46   : > { %s158_s30 = sand.u32 1, %s1377_s15   ;;  %s160_s6 = sand.u32 1, %s1373_s14  }
  0x47   : > { %s837_s7 = sshll.u32 %s160_s6, 5  ;;  %s862_s8 = sshll.u32 %s1377_s15, 9 }
  0x48   : > { %s1543_s29 = scalar_lea.hbm %s1665_s1, %s862_s8  ;;  %s162_s28 = scalar_lea.vmem [#allocation5], %s837_s7 }
  0x49   : > { %s169_s22 = sshll.u32 %s162_s28, 4  ;;  %s1547_s11 = scalar_lea.sflag [#allocation6], %s158_s30  ;;  %s1545_s22 = int_to_ptr.vmem [resolvable:$true] %s169_s22 }
  0x4a   : > { %s1273_s4 = scalar_lea.hbm %s1543_s29, 512  ;;  %p1682_p7 = scmp.ne.s32.totalorder %s1681_s5, 0 }
  0x4b   : > { %p1274_p6 = scmp.ne.s32.totalorder %s1543_s29, %s1273_s4  ;;  %s1278_s6 = scalar_lea.hbm %s1665_s1, 1024 }
  0x4c   : > { %p1275_p3 = pneg %p1682_p7  ;;  %p1279_p12 = scmp.lt.u32.totalorder %s1543_s29, %s1665_s1 }
  0x4d   : > { %p1280_p13 = scmp.lt.u32.totalorder %s1278_s6, %s1273_s4  ;;  %p1282_p8 = scmp.lt.u32.totalorder %s1273_s4, %s1543_s29 }
  0x4e   : > { %p1276_p5 = pnand %p1275_p3, %p1274_p6 }
  0x4f   : > { %p1281_p0 = por %p1280_p13, %p1279_p12 }
  0x50   : > { %p1277_p11 = pneg %p1276_p5 }
  0x51   : > { %p1283_p9 = por %p1282_p8, %p1281_p0 }
  0x53   : > { %p1284_p10 = pnand %p1283_p9, %p1277_p11 }
  0x55   : > { %1287 = shalt.err (!%p1284_p10)
}
  0x56   : > { %s1288_s30 = scalar_lea.vmem %s1545_s22, 512  ;;  %s1383_s7 = smov [#allocation5]  }
  0x57   : > { %p1289_p1 = scmp.ne.s32.totalorder %s1545_s22, %s1288_s30  ;;  %s1293_s10 = sshll.u32 %s1383_s7, 4  ;;  %s1294_s10 = int_to_ptr.vmem [resolvable:$false] %s1293_s10 }
  0x58   : > { %s1295_s28 = scalar_lea.vmem %s1294_s10, 1024  ;;  %p1296_p6 = scmp.lt.s32.totalorder %s1545_s22, %s1294_s10 }
  0x59   : > { %p1291_p4 = pnand %p1289_p1, %p1275_p3  ;;  %p1297_p5 = scmp.lt.s32.totalorder %s1295_s28, %s1288_s30 }
  0x5b   : > { %p1292_p2 = pneg %p1291_p4  ;;  %p1298_p12 = por %p1297_p5, %p1296_p6 }
  0x5d   : > { %p1299_p13 = pnand %p1298_p12, %p1292_p2 }
  0x5f   : > { %1302 = shalt.err (!%p1299_p13)
}
  0x60   : > { %1168 = dma.hbm_to_vmem [thread:$0]  (!%p1682_p7), %s1543_s29, 512, %s1545_s22, %s1547_s11, %s1381_s19, %s1381_s19, %s1382_s20  }
  0x61   : > { %p1683_p3 = scmp.ne.s32.totalorder %s1677_s26, 0 }
  0x62   : > { %p1684_p11 = scmp.eq.s32.totalorder (!%p1683_p3), %s1428_s16, 0 }
  0x63   : > { %181 = sbr.rel (%p1683_p3) target bundleno = 817 (0x331), region = 32 }
  0x6a   : > { %1348 = dma.done.wait (%p1684_p11), [#allocation3], 2048   ;;  %p1685_p0 = pmov %p1684_p11 }
  0x6b   : > { %s187_s5 = sand.u32 1, %s1428_s16   ;;  %s189_s4 = sand.u32 1, %s1369_s13  }
  0x6c   : > { %1350 = vsyncadd (%p1685_p0), [#allocation3], 4294965248  ;;  %s1588_s17 = sshll.u32 %s189_s4, 5  ;;  %s188_s19 = scalar_lea.sflag [#allocation6], %s187_s5 }
  0x6d   : > { %s191_s20 = scalar_lea.vmem [#allocation5], %s1588_s17  ;;  %p1686_p7 = scmp.ne.s32.totalorder %s1674_s23, 0 }
  0x6f   : > { %1352 = dma.done.wait (%p1686_p7), %s188_s19, 512  }
  0x70   : > { %1354 = vsyncadd (%p1686_p7), %s188_s19, 4294966784  ;;  %p1687_p8 = pmov %p1685_p0 }
  0x71   : > { %p1688_p9 = pmov %p1685_p0 }
  0x72   : > { %1356 = dma.done.wait (%p1687_p8), [#allocation6], 1536  }
  0x73   : > { %1358 = vsyncadd (%p1688_p9), [#allocation6], 4294965760  ;;  %v220_v0 = vld [vmem:[#allocation2] sm:$0xff]  ;;  %v221_v1 = vld [vmem:[#allocation2 + $0x8] sm:$0xff]  ;;  %vm334_vm0 = vcmask 261120   ;;  %s217_s23 = scalar_lea.vmem [#allocation8], %s1588_s17 }
  0x74   : > { %v222_v2 = vld [vmem:[#allocation2 + $0x10] sm:$0xff]  ;;  %v1046_v3 = vpack.c.bf16 %v221_v1, %v220_v0  ;;  %v223_v4 = vld [vmem:[#allocation2 + $0x18] sm:$0xff]  ;;  %v224_v6 = vld [vmem:[#allocation2 + $0x20] sm:$0xff]  ;;  %s738_s26 = sshll.u32 %s217_s23, 4  ;;  %s863_s29 = sshll.u32 %s1428_s16, 9  ;;  %s1613_s26 = int_to_ptr.vmem [resolvable:$true] %s738_s26 }
  0x75   : > { %v1050_v5 = vpack.c.bf16 %v223_v4, %v222_v2  ;;  %v225_v7 = vld [vmem:[#allocation2 + $0x28] sm:$0xff]  ;;  %v226_v8 = vld [vmem:[#allocation2 + $0x30] sm:$0xff]  ;;  %v227_v10 = vld [vmem:[#allocation2 + $0x38] sm:$0xff]  ;;  %s1618_s27 = scalar_lea.hbm %s1667_s3, %s863_s29  ;;  %s1622_s16 = scalar_lea.sflag [#allocation4], %s189_s4 }
  0x76   : > { %1047 = vmatprep.subr.bf16.mxu0 %v1046_v3  ;;  %v1054_v9 = vpack.c.bf16 %v225_v7, %v224_v6  ;;  %v236_v11 = vld [vmem:[%s191_s20] sm:$0xff]  ;;  %v237_v12 = vld [vmem:[%s191_s20 + $0x8] sm:$0xff]  ;;  %v238_v13 = vld [vmem:[%s191_s20 + $0x10] sm:$0xff]  ;;  %v1058_v18 = vpack.c.bf16 %v227_v10, %v226_v8  ;;  %s1303_s6 = scalar_lea.vmem %s1613_s26, 512  ;;  %p1689_p1 = scmp.ne.s32.totalorder %s1675_s24, 0 }
  0x77   : > { %1049 = vmatpush3.bf16.msra.mxu0 %v1046_v3  ;;  %960 = vmatprep.mubr.f32.mxu0 %v236_v11  ;;  %v239_v14 = vld [vmem:[%s191_s20 + $0x18] sm:$0xff]  ;;  %v1086_v15 = vpack.c.bf16 %v237_v12, %v236_v11  ;;  %v240_v16 = vld [vmem:[#allocation7] sm:$0xff]  ;;  %v229_v20 = vld [vmem:[#allocation2 + $0x48] sm:$0xff]  ;;  %p1304_p10 = scmp.ne.s32.totalorder %s1613_s26, %s1303_s6  ;;  %s1384_s8 = smov [#allocation8]  }
  0x78   : > { %1051 = vmatprep.subr.bf16.mxu0 %v1050_v5  ;;  %v1090_v17 = vpack.c.bf16 %v239_v14, %v238_v13  ;;  %988 = vmatprep.mubr.msk.f32.mxu1 %vm334_vm0, %v240_v16  ;;  %v228_v19 = vld [vmem:[#allocation2 + $0x40] sm:$0xff]  ;;  %v241_v22 = vld [vmem:[#allocation7 + $0x8] sm:$0xff]  ;;  %v230_v23 = vld [vmem:[#allocation2 + $0x50] sm:$0xff]  ;;  %s1307_s9 = sshll.u32 %s1384_s8, 4  ;;  %s1308_s9 = int_to_ptr.vmem [resolvable:$false] %s1307_s9 }
  0x79   : > { %1087 = vmatprep.subr.bf16.mxu1 %v1086_v15  ;;  %v1062_v21 = vpack.c.bf16 %v229_v20, %v228_v19  ;;  %v231_v24 = vld [vmem:[#allocation2 + $0x58] sm:$0xff]  ;;  %v242_v25 = vld [vmem:[#allocation7 + $0x10] sm:$0xff]  ;;  %v232_v28 = vld [vmem:[#allocation2 + $0x60] sm:$0xff]  ;;  %p1305_p4 = pnand %p1304_p10, %p1689_p1  ;;  %s1309_s30 = scalar_lea.vmem %s1308_s9, 1024 }
  0x7a   : > { %1089 = vmatpush3.bf16.msra.mxu1 %v1086_v15  ;;  %v1066_v26 = vpack.c.bf16 %v231_v24, %v230_v23  ;;  %v243_v27 = vld [vmem:[#allocation7 + $0x18] sm:$0xff]  ;;  %v233_v29 = vld [vmem:[#allocation2 + $0x68] sm:$0xff]  ;;  %v234_v31 = vld [vmem:[#allocation2 + $0x70] sm:$0xff]  ;;  %p1310_p6 = scmp.lt.s32.totalorder %s1613_s26, %s1308_s9  ;;  %p1311_p5 = scmp.lt.s32.totalorder %s1309_s30, %s1303_s6 }
  0x7b   : > { %1053 = vmatpush3.bf16.msra.mxu0 %v1050_v5  ;;  %1091 = vmatprep.subr.bf16.mxu1 %v1090_v17  ;;  %v1070_v30 = vpack.c.bf16 %v233_v29, %v232_v28  ;;  %v235_v32 = vld [vmem:[#allocation2 + $0x78] sm:$0xff]  ;;  %v330_v34 = vld [vmem:[#allocation7 + $0x20] sm:$0xff]  ;;  %v331_v43 = vld [vmem:[#allocation7 + $0x28] sm:$0xff]  ;;  %p1306_p2 = pneg %p1305_p4 }
  0x7c   : > { %1055 = vmatprep.subr.bf16.mxu0 %v1054_v9  ;;  %v1074_v33 = vpack.c.bf16 %v235_v32, %v234_v31  ;;  %v332_v44 = vld [vmem:[#allocation7 + $0x30] sm:$0xff]  ;;  %v333_v45 = vld [vmem:[#allocation7 + $0x38] sm:$0xff]  ;;  %v615_v46 = vld [vmem:[#allocation7 + $0x40] sm:$0xff]  ;;  %p1312_p12 = por %p1311_p5, %p1310_p6 }
  0x7d   : > { %v617_v47 = vld [vmem:[#allocation7 + $0x50] sm:$0xff]  ;;  %v616_v55 = vld [vmem:[#allocation7 + $0x48] sm:$0xff]  ;;  %v618_v56 = vld [vmem:[#allocation7 + $0x58] sm:$0xff] }
  0x7e   : > { %1093 = vmatpush3.bf16.msra.mxu1 %v1090_v17  ;;  %p1313_p13 = pnand %p1312_p12, %p1306_p2 }
  0x7f   : > { %1057 = vmatpush3.bf16.msra.mxu0 %v1054_v9  ;;  %1095 = vmatprep.subr.bf16.mxu1 %v1046_v3 }
  0x80   : > { %1059 = vmatprep.subr.bf16.mxu0 %v1058_v18 }
  0x81   : > { %989 = vmatmul.mubr.msk.f32.vlgmr.msra.gmra.mrb[0].mxu1 %vm334_vm0, %v241_v22 }
  0x82   : > { %1097 = vmatpush3.bf16.msra.mxu1 %v1046_v3  ;;  %991 = vmatprep.mubr.msk.f32.mxu1 %vm334_vm0, %v242_v25 }
  0x83   : > { %1061 = vmatpush3.bf16.msra.mxu0 %v1058_v18  ;;  %1099 = vmatprep.subr.bf16.mxu1 %v1050_v5 }
  0x84   : > { %1063 = vmatprep.subr.bf16.mxu0 %v1062_v21 }
  0x85   : > { %992 = vmatmul.mubr.msk.f32.gmra.mrb[2].mxu1 %vm334_vm0, %v243_v27 }
  0x86   : > { %1101 = vmatpush3.bf16.msra.mxu1 %v1050_v5 }
  0x87   : > { %1065 = vmatpush3.bf16.msra.mxu0 %v1062_v21  ;;  %1103 = vmatprep.subr.bf16.mxu1 %v1054_v9 }
  0x88   : > { %1067 = vmatprep.subr.bf16.mxu0 %v1066_v26 }
  0x8a   : > { %1105 = vmatpush3.bf16.msra.mxu1 %v1054_v9 }
  0x8b   : > { %1069 = vmatpush3.bf16.msra.mxu0 %v1066_v26  ;;  %1107 = vmatprep.subr.bf16.mxu1 %v1058_v18 }
  0x8c   : > { %1071 = vmatprep.subr.bf16.mxu0 %v1070_v30 }
  0x8e   : > { %1109 = vmatpush3.bf16.msra.mxu1 %v1058_v18 }
  0x8f   : > { %1073 = vmatpush3.bf16.msra.mxu0 %v1070_v30  ;;  %1111 = vmatprep.subr.bf16.mxu1 %v1062_v21 }
  0x90   : > { %1075 = vmatprep.subr.bf16.mxu0 %v1074_v33 }
  0x92   : > { %1113 = vmatpush3.bf16.msra.mxu1 %v1062_v21 }
  0x93   : > { %1077 = vmatpush3.bf16.msra.mxu0 %v1074_v33  ;;  %1115 = vmatprep.subr.bf16.mxu1 %v1066_v26 }
  0x96   : > { %961 = vmatmul.mubr.f32.vlgmr.msra.gmra.mrb[0].mxu0 %v237_v12  ;;  %1117 = vmatpush3.bf16.msra.mxu1 %v1066_v26 }
  0x97   : > { %963 = vmatprep.mubr.f32.mxu0 %v238_v13  ;;  %1119 = vmatprep.subr.bf16.mxu1 %v1070_v30 }
  0x9a   : > { %964 = vmatmul.mubr.f32.gmra.mrb[2].mxu0 %v239_v14  ;;  %1121 = vmatpush3.bf16.msra.mxu1 %v1070_v30 }
  0x9b   : > { %1123 = vmatprep.subr.bf16.mxu1 %v1074_v33  ;;  %974 = vmatprep.mubr.msk.f32.mxu0 %vm334_vm0, %v330_v34 }
  0x9e   : > { %1125 = vmatpush3.bf16.msra.mxu1 %v1074_v33 }
 0x154   : > { %v990_v35 = vpop.f32.mrb[0].mxu1 }
 0x155   : > { %v510_v36 = vpop.f32.mrb[1].mxu1 }
 0x169   : > { %v962_v37 = vpop.f32.mrb[0].mxu0 }
 0x16a   : > { %v310_v38 = vpop.f32.mrb[1].mxu0 }
 0x16b   : > { %v1078_v39 = vpack.c.bf16 %v962_v37, %v310_v38  ;;  %1026 = vmatprep.mubr.f32.mxu1 %v310_v38 }
 0x16c   : > { %1027 = vmatmul.mubr.f32.vlgmr.msra.gmra.mrb[4].mxu1 %v962_v37 }
 0x16d   : > { %v965_v40 = vpop.f32.mrb[2].mxu0  ;;  %1079 = vmatprep.subr.bf16.mxu0 %v1078_v39 }
 0x16e   : > { %v320_v41 = vpop.f32.mrb[3].mxu0  ;;  %1081 = vmatpush3.bf16.msra.mxu0 %v1078_v39 }
 0x16f   : > { %v1082_v42 = vpack.c.bf16 %v965_v40, %v320_v41  ;;  %1029 = vmatprep.mubr.f32.mxu1 %v320_v41 }
 0x170   : > { %1030 = vmatmul.mubr.f32.gmra.mrb[6].mxu1 %v965_v40 }
 0x171   : > { %1083 = vmatprep.subr.bf16.mxu0 %v1082_v42  ;;  %1043 = vmatprep.mubr.msk.f32.mxu1 %vm334_vm0, %v617_v47 }
 0x172   : > { %1085 = vmatpush3.bf16.msra.mxu0 %v1082_v42 }
 0x175   : > { %975 = vmatmul.mubr.msk.f32.vlgmr.msra.gmra.mrb[4].mxu0 %vm334_vm0, %v331_v43 }
 0x176   : > { %977 = vmatprep.mubr.msk.f32.mxu0 %vm334_vm0, %v332_v44 }
 0x179   : > { %978 = vmatmul.mubr.msk.f32.gmra.mrb[6].mxu0 %vm334_vm0, %v333_v45 }
 0x17a   : > { %1040 = vmatprep.mubr.msk.f32.mxu0 %vm334_vm0, %v615_v46 }
 0x23f   : > { %v1028_v48 = vpop.f32.mrb[4].mxu1 }
 0x240   : > { %v595_v49 = vpop.f32.mrb[5].mxu1 }
 0x241   : > { %v1126_v50 = vpack.c.bf16 %v1028_v48, %v595_v49 }
 0x243   : > { %v1031_v51 = vpop.f32.mrb[6].mxu1  ;;  %1127 = vmatprep.subr.bf16.mxu0 %v1126_v50  ;;  %1134 = vmatprep.subr.bf16.mxu1 %v1126_v50 }
 0x244   : > { %v605_v52 = vpop.f32.mrb[7].mxu1  ;;  %1129 = vmatpush3.bf16.msra.mxu0 %v1126_v50  ;;  %1136 = vmatpush3.bf16.msra.mxu1 %v1126_v50 }
 0x245   : > { %v1130_v53 = vpack.c.bf16 %v1031_v51, %v605_v52 }
 0x247   : > { %1131 = vmatprep.subr.bf16.mxu0 %v1130_v53  ;;  %1135 = vmatprep.subr.bf16.mxu1 %v1130_v53 }
 0x248   : > { %v976_v54 = vpop.f32.mrb[4].mxu0  ;;  %1133 = vmatpush3.bf16.msra.mxu0 %v1130_v53  ;;  %1137 = vmatpush3.bf16.msra.mxu1 %v1130_v53 }
 0x249   : > { %v516_v57 = vadd.f32 %v990_v35, %v976_v54  ;;  %v413_v58 = vpop.f32.mrb[5].mxu0 }
 0x24a   : > { %v511_v59 = vadd.f32 %v510_v36, %v413_v58 }
 0x24b   : > { %1041 = vmatmul.mubr.msk.f32.vlgmr.msra.gmra.mrb[8].mxu0 %vm334_vm0, %v616_v55  ;;  %1044 = vmatmul.mubr.msk.f32.vlgmr.msra.gmra.mrb[2].mxu1 %vm334_vm0, %v618_v56 }
 0x24c   : > { %v979_v60 = vpop.f32.mrb[6].mxu0 }
 0x24d   : > { %v423_v61 = vpop.f32.mrb[7].mxu0 }
 0x31e   : > { %v1042_v62 = vpop.f32.mrb[8].mxu0  ;;  %v1045_v63 = vpop.f32.mrb[2].mxu1 }
 0x31f   : > { %v717_v0 = vadd.f32 %v1042_v62, %v516_v57  ;;  %v1142_v1 = vadd.f32 %v1045_v63, %v979_v60  ;;  %v697_v2 = vpop.f32.mrb[9].mxu0  ;;  %v707_v3 = vpop.f32.mrb[3].mxu1 }
 0x320   : > { %v716_v4 = vadd.f32 %v697_v2, %v511_v59  ;;  %v1143_v5 = vadd.f32 %v707_v3, %v423_v61 }
 0x321   : > { %721 = vst [vmem:[%s217_s23 + $0x8] sm:$0xff] %v717_v0  ;;  %723 = vst [vmem:[%s217_s23 + $0x18] sm:$0xff] %v1142_v1 }
 0x322   : > { %720 = vst [vmem:[%s217_s23] sm:$0xff] %v716_v4  ;;  %722 = vst [vmem:[%s217_s23 + $0x10] sm:$0xff] %v1143_v5 }
 0x323   : > { %1316 = shalt.err (!%p1313_p13)
}
 0x324   : > { %s1317_s7 = scalar_lea.hbm %s1618_s27, 512  ;;  %s1321_s5 = scalar_lea.hbm %s1667_s3, 1024 }
 0x325   : > { %p1318_p3 = scmp.ne.s32.totalorder %s1618_s27, %s1317_s7  ;;  %p1322_p7 = scmp.lt.u32.totalorder %s1618_s27, %s1667_s3 }
 0x326   : > { %p1323_p8 = scmp.lt.u32.totalorder %s1321_s5, %s1317_s7  ;;  %p1325_p10 = scmp.lt.u32.totalorder %s1317_s7, %s1618_s27 }
 0x327   : > { %p1319_p11 = pnand %p1318_p3, %p1689_p1 }
 0x328   : > { %p1324_p9 = por %p1323_p8, %p1322_p7 }
 0x329   : > { %p1320_p0 = pneg %p1319_p11 }
 0x32a   : > { %p1326_p4 = por %p1325_p10, %p1324_p9 }
 0x32c   : > { %p1327_p2 = pnand %p1326_p4, %p1320_p0 }
 0x32e   : > { %1330 = shalt.err (!%p1327_p2)
}
 0x32f   : > { %s1385_s19 = smov 128   ;;  %s1386_s20 = smov 8  }
 0x330   : > { %1156 = dma.vmem_to_hbm [thread:$0]  (%p1689_p1), %s1613_s26, 512, %s1618_s27, %s1622_s16, %s1385_s19, %s1385_s19, %s1386_s20  }
 0x331 PF: > { %s753_s23 = sand.u32 1, %s1365_s12   ;;  %p1690_p6 = scmp.ne.s32.totalorder %s1676_s25, 0 }
 0x332   : > { %p1691_p5 = scmp.ge.s32.totalorder %s1377_s15, 2  ;;  %s754_s29 = scalar_lea.sflag [#allocation4], %s753_s23 }
 0x334   : > { %p1170_p12 = pnand %p1691_p5, %p1690_p6 }
 0x336   : > { %1360 = dma.done.wait (!%p1170_p12), %s754_s29, 512  }
 0x337   : > { %1362 = vsyncadd (!%p1170_p12), %s754_s29, 4294966784  ;;  %p17_p13 = scmp.ge.s32.totalorder %s1432_s18, 4   ;;  %s1692_s12 = smov %s1369_s13 }
 0x338   : > { %s1693_s13 = smov %s1373_s14  ;;  %s1694_s14 = smov %s1444_s21 }
 0x339   : > { %s1695_s15 = smov %s1432_s18  ;;  %19 = sbr.rel (!%p17_p13) target bundleno = 6 (0x6), region = 88 }
 0x340   :  { %759 = vsyncpa [#allocation3], 1 }
 0x341   :  { %761 = vsyncpa [#allocation3 + $0x1], 1 }
 0x342   :  { %762 = vsyncpa [#allocation6], 1 }
 0x343   :  { %764 = vsyncpa [#allocation6 + $0x1], 1 }
 0x344   :  { %765 = vsyncpa [#allocation4], 1 }
 0x345   :  { %767 = vsyncpa [#allocation4 + $0x1], 1 }

</bundles_post_ra>
